<compile_context>
chip_gen: v5e
topology: v5e:2x2
jax: 0.10.0
libtpu: 0.0.40
codegen_flags: <defaults>
</compile_context>

<pallas_src>
import jax
import jax.numpy as jnp
from jax import lax
from jax.experimental import pallas as pl
from jax.experimental.pallas import tpu as pltpu


def _round_up(x, m):
    return (x + m - 1) // m * m


# ---------------------------------------------------------------------------
# One-time parameter preparation: gate fusion, head lane-padding, flat packing.
# ---------------------------------------------------------------------------
def pack_params(params, output_size):
    """Returns (packed (R, LANES) f32 buffer, layout dict name -> (row0, nrows, ncols))."""
    h_pos = params["whr"].shape[0]

    # Fuse GRU gate weights [r|z|n]; fold the pre-summed r/z biases into the input-bias slot.
    wi3 = jnp.concatenate([params["wir"], params["wiz"], params["win"]], axis=1)
    wh3 = jnp.concatenate([params["whr"], params["whz"], params["whn"]], axis=1)
    bi3 = jnp.concatenate([params["br"], params["bz"], params["bin"]], axis=1)
    bh3 = jnp.concatenate(
        [jnp.zeros_like(params["br"]), jnp.zeros_like(params["bz"]), params["bhn"]], axis=1)

    # Lane-dense head: pad output columns to a multiple of 128 (sliced back in the wrapper).
    out_pad = pl.cdiv(output_size, 128) * 128
    lanes = max(128, out_pad)
    ws2 = jnp.pad(params["ws2"], ((0, 0), (0, out_pad - output_size)))
    bs2 = jnp.pad(params["bs2"], ((0, 0), (0, out_pad - output_size)))

    # Concat-free Sample head: split ws1 into the position / threats halves.
    ws1p = params["ws1"][:h_pos]
    ws1t = params["ws1"][h_pos:]

    tensors = [
        ("wi3", wi3), ("bi3", bi3), ("wh3", wh3), ("bh3", bh3),
        ("wt1", params["wt1"]), ("bt1", params["bt1"]),
        ("wt2", params["wt2"]), ("bt2", params["bt2"]),
        ("ws1p", ws1p), ("ws1t", ws1t), ("bs1", params["bs1"]),
        ("ws2", ws2), ("bs2", bs2),
    ]

    layout = {}
    blocks = []
    row = 0
    for name, a in tensors:
        a = a.astype(jnp.float32)
        nr, nc = a.shape
        assert nc <= lanes
        layout[name] = (row, nr, nc)
        pad_r = (-nr) % 8                      # keep every block sublane-aligned
        blocks.append(jnp.pad(a, ((0, pad_r), (0, lanes - nc))))
        row += nr + pad_r
    packed = jnp.concatenate(blocks, axis=0)   # (R, lanes), R multiple of 8
    return packed, layout


# ---------------------------------------------------------------------------
# Kernel factory (layout / dims are static Python ints captured by closure)
# ---------------------------------------------------------------------------
def _make_kernel(layout, t_steps, h_pos):
    H = h_pos
    H3 = 3 * H

    def get(p_ref, name):
        r0, nr, nc = layout[name]
        return p_ref[r0:r0 + nr, 0:nc]         # static ref slice: free view

    def kernel(pos_ref, thr_ref, p_ref, out_ref):
        # pos_ref: (T, tile_b, D_pos) time-major; thr_ref: (tile_b, D_thr);
        # p_ref: packed params; out_ref: (tile_b, LANES)
        T, tile_b, d_pos = pos_ref.shape

        wi3 = get(p_ref, "wi3")
        bi3 = get(p_ref, "bi3")
        wh3 = get(p_ref, "wh3")
        bh3 = get(p_ref, "bh3")

        # ---- Hoisted input projection for ALL timesteps: one matmul, time-major layout ----
        x2d = pos_ref[...].reshape(T * tile_b, d_pos)          # free contiguous reshape
        xproj = (jnp.dot(x2d, wi3, preferred_element_type=jnp.float32)
                 + jnp.broadcast_to(bi3, (T * tile_b, H3)))
        xproj = xproj.reshape(T, tile_b, H3)                   # row t*tile_b + b -> (t, b, :)

        # Hoist loop invariants (JAX does not CSE broadcast_in_dim).
        bh3b = jnp.broadcast_to(bh3, (tile_b, H3))

        # ---- GRU over T timesteps (PyTorch nn.GRU semantics, h0 = 0) ----
        # T is static & small: full unroll.  (Re-check vreg pressure / switch to
        # lax.fori_loop(unroll=True) if tile_b grows toward 256.)
        h = jnp.zeros((tile_b, H), jnp.float32)
        for t in range(T):
            xp = xproj[t]                                                   # contiguous (tile_b, 3H)
            hp = jnp.dot(h, wh3, preferred_element_type=jnp.float32) + bh3b
            rz = jax.nn.sigmoid(xp[:, :2 * H] + hp[:, :2 * H])             # fused r|z: one EUP push
            r = rz[:, :H]
            z = rz[:, H:]
            n = jnp.tanh(xp[:, 2 * H:] + r * hp[:, 2 * H:])
            h = (1.0 - z) * n + z * h

        ep = jnp.maximum(h, 0.0)               # EmbforPosition output: relu(h_T), (tile_b, H_pos)

        # ---- EmbforThreats: Linear -> Linear -> relu ----
        wt1 = get(p_ref, "wt1")
        bt1 = get(p_ref, "bt1")
        wt2 = get(p_ref, "wt2")
        bt2 = get(p_ref, "bt2")
        t1 = jnp.dot(thr_ref[...], wt1, preferred_element_type=jnp.float32) + bt1
        et = jnp.maximum(jnp.dot(t1, wt2, preferred_element_type=jnp.float32) + bt2, 0.0)

        # ---- Sample head (concat-free) : Linear -> relu -> Linear (lane-dense store) ----
        ws1p = get(p_ref, "ws1p")
        ws1t = get(p_ref, "ws1t")
        bs1 = get(p_ref, "bs1")
        h1 = jnp.maximum(
            jnp.dot(ep, ws1p, preferred_element_type=jnp.float32)
            + jnp.dot(et, ws1t, preferred_element_type=jnp.float32) + bs1, 0.0)
        ws2 = get(p_ref, "ws2")
        bs2 = get(p_ref, "bs2")
        out_ref[...] = jnp.dot(h1, ws2, preferred_element_type=jnp.float32) + bs2

    return kernel


# ---------------------------------------------------------------------------
# Wrapper: batch-tiled parallel grid
# ---------------------------------------------------------------------------
def model_layer_forward(position_btd, threats, packed, layout, output_size):
    """position_btd: (B, T, D_pos) batch-first; threats: (B, D_thr); packed/layout from pack_params."""
    B, T, D = position_btd.shape
    D_thr = threats.shape[1]
    lanes = packed.shape[1]
    H = layout["wh3"][1]                       # rows of fused hidden weight = hidden size

    # Batch tile: multiple of 8 sublanes, capped at 128 (fills the MXU M dim at production batch).
    tile_b = min(128, _round_up(B, 8))
    b_pad = _round_up(B, tile_b)

    # Time-major position (one tiny XLA transpose per call; every GRU step then reads a
    # contiguous window inside the kernel) + batch padding.
    pos_tbd = jnp.transpose(position_btd.astype(jnp.float32), (1, 0, 2))
    pos_tbd = jnp.pad(pos_tbd, ((0, 0), (0, b_pad - B), (0, 0)))
    thr = jnp.pad(threats.astype(jnp.float32), ((0, b_pad - B), (0, 0)))

    kernel = _make_kernel(layout, T, H)
    grid = (b_pad // tile_b,)

    out = pl.pallas_call(
        kernel,
        out_shape=jax.ShapeDtypeStruct((b_pad, lanes), jnp.float32),
        grid_spec=pltpu.PrefetchScalarGridSpec(
            num_scalar_prefetch=0,
            grid=grid,
            in_specs=[
                pl.BlockSpec((T, tile_b, D), lambda i: (0, i, 0)),
                pl.BlockSpec((tile_b, D_thr), lambda i: (i, 0)),
                pl.BlockSpec(packed.shape, lambda i: (0, 0)),      # params: same block every step
            ],
            out_specs=pl.BlockSpec((tile_b, lanes), lambda i: (i, 0)),
        ),
        compiler_params=pltpu.CompilerParams(
            dimension_semantics=("parallel",)),                    # shards batch tiles across TCs
    )(pos_tbd, thr, packed)
    return out[:B, :output_size]


# ---------------------------------------------------------------------------
# Pure-JAX reference (mirrors the PyTorch forward) for correctness checking
# ---------------------------------------------------------------------------
def reference_forward(position_btd, threats, params):
    B, T, _ = position_btd.shape
    H = params["whr"].shape[0]

    def step(h, x_t):
        r = jax.nn.sigmoid(x_t @ params["wir"] + h @ params["whr"] + params["br"])
        z = jax.nn.sigmoid(x_t @ params["wiz"] + h @ params["whz"] + params["bz"])
        n = jnp.tanh(x_t @ params["win"] + params["bin"]
                     + r * (h @ params["whn"] + params["bhn"]))
        h_new = (1.0 - z) * n + z * h
        return h_new, None

    h0 = jnp.zeros((B, H), jnp.float32)
    hT, _ = lax.scan(step, h0, jnp.transpose(position_btd, (1, 0, 2)))
    ep = jax.nn.relu(hT)

    et = jax.nn.relu((threats @ params["wt1"] + params["bt1"]) @ params["wt2"] + params["bt2"])
    e = jnp.concatenate([ep, et], axis=1)
    h1 = jax.nn.relu(e @ params["ws1"] + params["bs1"])
    return h1 @ params["ws2"] + params["bs2"]


# ---------------------------------------------------------------------------
# Deterministic parameter init (synthetic; shapes follow the module __init__)
# ---------------------------------------------------------------------------
def init_params(key, d_pos, d_thr, h_pos, h_thr, h_sam, out_size):
    def u(k, shape, scale=0.1):
        return jax.random.uniform(k, shape, jnp.float32, -scale, scale)

    keys = jax.random.split(key, 20)
    p = {
        # GRU (gate-split, transposed: (in, out)); r/z biases pre-summed (b_ih + b_hh).
        # NOTE: anyone loading real PyTorch nn.GRU weights must replicate this split exactly.
        "wir": u(keys[0], (d_pos, h_pos)), "wiz": u(keys[1], (d_pos, h_pos)),
        "win": u(keys[2], (d_pos, h_pos)),
        "whr": u(keys[3], (h_pos, h_pos)), "whz": u(keys[4], (h_pos, h_pos)),
        "whn": u(keys[5], (h_pos, h_pos)),
        "br":  u(keys[6], (1, h_pos)), "bz": u(keys[7], (1, h_pos)),
        "bin": u(keys[8], (1, h_pos)), "bhn": u(keys[9], (1, h_pos)),
        # EmbforThreats
        "wt1": u(keys[10], (d_thr, h_thr)), "bt1": u(keys[11], (1, h_thr)),
        "wt2": u(keys[12], (h_thr, h_thr)), "bt2": u(keys[13], (1, h_thr)),
        # Sample
        "ws1": u(keys[14], (h_pos + h_thr, h_sam)), "bs1": u(keys[15], (1, h_sam)),
        "ws2": u(keys[16], (h_sam, out_size)),      "bs2": u(keys[17], (1, out_size)),
    }
    return p


if __name__ == "__main__":
    # Small shapes consistent with the module's forward.
    B, T = 2, 8
    inpSizeforPosition, inpSizeforThreat = 16, 8
    hidSizeforPosition, hidSizeforThreat = 32, 32
    hidSizeforSam, outputSize = 64, 8

    key = jax.random.PRNGKey(0)
    k_pos, k_thr, k_par = jax.random.split(key, 3)

    position = jax.random.normal(k_pos, (B, T, inpSizeforPosition), jnp.float32)
    threats = jax.random.normal(k_thr, (B, inpSizeforThreat), jnp.float32)
    params = init_params(k_par, inpSizeforPosition, inpSizeforThreat,
                         hidSizeforPosition, hidSizeforThreat, hidSizeforSam, outputSize)

    # One-time parameter packing (NOT per call).
    packed, layout = pack_params(params, outputSize)
    packed = jax.block_until_ready(packed)

    out = model_layer_forward(position, threats, packed, layout, outputSize)
    out = jax.block_until_ready(out)

    ref = reference_forward(position, threats, params)
    assert out.shape == (B, outputSize)
    assert jnp.allclose(out, ref, rtol=1e-4, atol=1e-4), "Pallas output mismatch vs reference"

    print("KERNEL_OK")
</pallas_src>

<mosaic_0001>
module attributes {stable_mosaic.version = 11 : i64} {
  func.func @kernel(%arg0: i32, %arg1: memref<8x8x16xf32, #tpu.memory_space<vmem>>, %arg2: memref<8x8xf32, #tpu.memory_space<vmem>>, %arg3: memref<264x128xf32, #tpu.memory_space<vmem>>, %arg4: memref<8x128xf32, #tpu.memory_space<vmem>>) attributes {dimension_semantics = [#tpu.dimension_semantics<parallel>], iteration_bounds = array<i64: 1>, scalar_prefetch = 0 : i64, scratch_operands = 0 : i64, tpu.core_type = #tpu.core_type<tc>, window_params = [{transform_indices = @transform_0, window_bounds = array<i64: 8, 8, 16>}, {transform_indices = @transform_1, window_bounds = array<i64: 8, 8>}, {pipeline_mode = #tpu.pipeline_mode<synchronous>, transform_indices = @transform_2, window_bounds = array<i64: 264, 128>}, {transform_indices = @transform_3, window_bounds = array<i64: 8, 128>}]} {
    %c0 = arith.constant 0 : index
    %c0_0 = arith.constant 0 : index
    %0 = vector.load %arg3[%c0, %c0_0] : memref<264x128xf32, #tpu.memory_space<vmem>>, vector<16x96xf32>
    %c16 = arith.constant 16 : index
    %c0_1 = arith.constant 0 : index
    %1 = vector.load %arg3[%c16, %c0_1] : memref<264x128xf32, #tpu.memory_space<vmem>>, vector<1x96xf32>
    %c24 = arith.constant 24 : index
    %c0_2 = arith.constant 0 : index
    %2 = vector.load %arg3[%c24, %c0_2] : memref<264x128xf32, #tpu.memory_space<vmem>>, vector<32x96xf32>
    %c56 = arith.constant 56 : index
    %c0_3 = arith.constant 0 : index
    %3 = vector.load %arg3[%c56, %c0_3] : memref<264x128xf32, #tpu.memory_space<vmem>>, vector<1x96xf32>
    %c0_4 = arith.constant 0 : index
    %c0_5 = arith.constant 0 : index
    %c0_6 = arith.constant 0 : index
    %4 = vector.load %arg1[%c0_4, %c0_5, %c0_6] : memref<8x8x16xf32, #tpu.memory_space<vmem>>, vector<8x8x16xf32>
    %5 = vector.shape_cast %4 : vector<8x8x16xf32> to vector<64x16xf32>
    %cst = arith.constant dense<0.000000e+00> : vector<64x96xf32>
    %6 = tpu.matmul %5, %0, %cst {dimension_numbers = #tpu.dot_dimension_numbers<[1], [0], [0], [1], [0, 0, 1, 1], [], []>} : vector<64x16xf32>, vector<16x96xf32>, vector<64x96xf32> -> vector<64x96xf32>
    %7 = vector.shape_cast %1 : vector<1x96xf32> to vector<1x96xf32>
    %8 = vector.broadcast %7 : vector<1x96xf32> to vector<64x96xf32>
    %9 = arith.addf %6, %8 : vector<64x96xf32>
    %10 = vector.shape_cast %9 : vector<64x96xf32> to vector<8x8x96xf32>
    %11 = vector.shape_cast %3 : vector<1x96xf32> to vector<1x96xf32>
    %12 = vector.broadcast %11 : vector<1x96xf32> to vector<8x96xf32>
    %cst_7 = arith.constant 0.000000e+00 : f32
    %13 = vector.broadcast %cst_7 : f32 to vector<8x32xf32>
    %14 = vector.extract_strided_slice %10 {offsets = [0, 0, 0], sizes = [1, 8, 96], strides = [1, 1, 1]} : vector<8x8x96xf32> to vector<1x8x96xf32>
    %15 = vector.shape_cast %14 : vector<1x8x96xf32> to vector<8x96xf32>
    %cst_8 = arith.constant dense<0.000000e+00> : vector<8x96xf32>
    %16 = tpu.matmul %13, %2, %cst_8 {dimension_numbers = #tpu.dot_dimension_numbers<[1], [0], [0], [1], [0, 0, 1, 1], [], []>} : vector<8x32xf32>, vector<32x96xf32>, vector<8x96xf32> -> vector<8x96xf32>
    %17 = arith.addf %16, %12 : vector<8x96xf32>
    %18 = vector.extract_strided_slice %15 {offsets = [0, 0], sizes = [8, 64], strides = [1, 1]} : vector<8x96xf32> to vector<8x64xf32>
    %19 = vector.extract_strided_slice %17 {offsets = [0, 0], sizes = [8, 64], strides = [1, 1]} : vector<8x96xf32> to vector<8x64xf32>
    %20 = arith.addf %18, %19 : vector<8x64xf32>
    %21 = arith.negf %20 : vector<8x64xf32>
    %22 = math.exp %21 : vector<8x64xf32>
    %cst_9 = arith.constant 1.000000e+00 : f32
    %23 = vector.broadcast %cst_9 : f32 to vector<8x64xf32>
    %24 = arith.addf %23, %22 : vector<8x64xf32>
    %25 = arith.divf %23, %24 : vector<8x64xf32>
    %26 = vector.extract_strided_slice %25 {offsets = [0, 0], sizes = [8, 32], strides = [1, 1]} : vector<8x64xf32> to vector<8x32xf32>
    %27 = vector.extract_strided_slice %25 {offsets = [0, 32], sizes = [8, 32], strides = [1, 1]} : vector<8x64xf32> to vector<8x32xf32>
    %28 = vector.extract_strided_slice %15 {offsets = [0, 64], sizes = [8, 32], strides = [1, 1]} : vector<8x96xf32> to vector<8x32xf32>
    %29 = vector.extract_strided_slice %17 {offsets = [0, 64], sizes = [8, 32], strides = [1, 1]} : vector<8x96xf32> to vector<8x32xf32>
    %30 = arith.mulf %26, %29 : vector<8x32xf32>
    %31 = arith.addf %28, %30 : vector<8x32xf32>
    %32 = math.tanh %31 : vector<8x32xf32>
    %cst_10 = arith.constant 1.000000e+00 : f32
    %33 = vector.broadcast %cst_10 : f32 to vector<8x32xf32>
    %34 = arith.subf %33, %27 : vector<8x32xf32>
    %35 = arith.mulf %34, %32 : vector<8x32xf32>
    %36 = arith.mulf %27, %13 : vector<8x32xf32>
    %37 = arith.addf %35, %36 : vector<8x32xf32>
    %38 = vector.extract_strided_slice %10 {offsets = [1, 0, 0], sizes = [1, 8, 96], strides = [1, 1, 1]} : vector<8x8x96xf32> to vector<1x8x96xf32>
    %39 = vector.shape_cast %38 : vector<1x8x96xf32> to vector<8x96xf32>
    %cst_11 = arith.constant dense<0.000000e+00> : vector<8x96xf32>
    %40 = tpu.matmul %37, %2, %cst_11 {dimension_numbers = #tpu.dot_dimension_numbers<[1], [0], [0], [1], [0, 0, 1, 1], [], []>} : vector<8x32xf32>, vector<32x96xf32>, vector<8x96xf32> -> vector<8x96xf32>
    %41 = arith.addf %40, %12 : vector<8x96xf32>
    %42 = vector.extract_strided_slice %39 {offsets = [0, 0], sizes = [8, 64], strides = [1, 1]} : vector<8x96xf32> to vector<8x64xf32>
    %43 = vector.extract_strided_slice %41 {offsets = [0, 0], sizes = [8, 64], strides = [1, 1]} : vector<8x96xf32> to vector<8x64xf32>
    %44 = arith.addf %42, %43 : vector<8x64xf32>
    %45 = arith.negf %44 : vector<8x64xf32>
    %46 = math.exp %45 : vector<8x64xf32>
    %cst_12 = arith.constant 1.000000e+00 : f32
    %47 = vector.broadcast %cst_12 : f32 to vector<8x64xf32>
    %48 = arith.addf %47, %46 : vector<8x64xf32>
    %49 = arith.divf %47, %48 : vector<8x64xf32>
    %50 = vector.extract_strided_slice %49 {offsets = [0, 0], sizes = [8, 32], strides = [1, 1]} : vector<8x64xf32> to vector<8x32xf32>
    %51 = vector.extract_strided_slice %49 {offsets = [0, 32], sizes = [8, 32], strides = [1, 1]} : vector<8x64xf32> to vector<8x32xf32>
    %52 = vector.extract_strided_slice %39 {offsets = [0, 64], sizes = [8, 32], strides = [1, 1]} : vector<8x96xf32> to vector<8x32xf32>
    %53 = vector.extract_strided_slice %41 {offsets = [0, 64], sizes = [8, 32], strides = [1, 1]} : vector<8x96xf32> to vector<8x32xf32>
    %54 = arith.mulf %50, %53 : vector<8x32xf32>
    %55 = arith.addf %52, %54 : vector<8x32xf32>
    %56 = math.tanh %55 : vector<8x32xf32>
    %cst_13 = arith.constant 1.000000e+00 : f32
    %57 = vector.broadcast %cst_13 : f32 to vector<8x32xf32>
    %58 = arith.subf %57, %51 : vector<8x32xf32>
    %59 = arith.mulf %58, %56 : vector<8x32xf32>
    %60 = arith.mulf %51, %37 : vector<8x32xf32>
    %61 = arith.addf %59, %60 : vector<8x32xf32>
    %62 = vector.extract_strided_slice %10 {offsets = [2, 0, 0], sizes = [1, 8, 96], strides = [1, 1, 1]} : vector<8x8x96xf32> to vector<1x8x96xf32>
    %63 = vector.shape_cast %62 : vector<1x8x96xf32> to vector<8x96xf32>
    %cst_14 = arith.constant dense<0.000000e+00> : vector<8x96xf32>
    %64 = tpu.matmul %61, %2, %cst_14 {dimension_numbers = #tpu.dot_dimension_numbers<[1], [0], [0], [1], [0, 0, 1, 1], [], []>} : vector<8x32xf32>, vector<32x96xf32>, vector<8x96xf32> -> vector<8x96xf32>
    %65 = arith.addf %64, %12 : vector<8x96xf32>
    %66 = vector.extract_strided_slice %63 {offsets = [0, 0], sizes = [8, 64], strides = [1, 1]} : vector<8x96xf32> to vector<8x64xf32>
    %67 = vector.extract_strided_slice %65 {offsets = [0, 0], sizes = [8, 64], strides = [1, 1]} : vector<8x96xf32> to vector<8x64xf32>
    %68 = arith.addf %66, %67 : vector<8x64xf32>
    %69 = arith.negf %68 : vector<8x64xf32>
    %70 = math.exp %69 : vector<8x64xf32>
    %cst_15 = arith.constant 1.000000e+00 : f32
    %71 = vector.broadcast %cst_15 : f32 to vector<8x64xf32>
    %72 = arith.addf %71, %70 : vector<8x64xf32>
    %73 = arith.divf %71, %72 : vector<8x64xf32>
    %74 = vector.extract_strided_slice %73 {offsets = [0, 0], sizes = [8, 32], strides = [1, 1]} : vector<8x64xf32> to vector<8x32xf32>
    %75 = vector.extract_strided_slice %73 {offsets = [0, 32], sizes = [8, 32], strides = [1, 1]} : vector<8x64xf32> to vector<8x32xf32>
    %76 = vector.extract_strided_slice %63 {offsets = [0, 64], sizes = [8, 32], strides = [1, 1]} : vector<8x96xf32> to vector<8x32xf32>
    %77 = vector.extract_strided_slice %65 {offsets = [0, 64], sizes = [8, 32], strides = [1, 1]} : vector<8x96xf32> to vector<8x32xf32>
    %78 = arith.mulf %74, %77 : vector<8x32xf32>
    %79 = arith.addf %76, %78 : vector<8x32xf32>
    %80 = math.tanh %79 : vector<8x32xf32>
    %cst_16 = arith.constant 1.000000e+00 : f32
    %81 = vector.broadcast %cst_16 : f32 to vector<8x32xf32>
    %82 = arith.subf %81, %75 : vector<8x32xf32>
    %83 = arith.mulf %82, %80 : vector<8x32xf32>
    %84 = arith.mulf %75, %61 : vector<8x32xf32>
    %85 = arith.addf %83, %84 : vector<8x32xf32>
    %86 = vector.extract_strided_slice %10 {offsets = [3, 0, 0], sizes = [1, 8, 96], strides = [1, 1, 1]} : vector<8x8x96xf32> to vector<1x8x96xf32>
    %87 = vector.shape_cast %86 : vector<1x8x96xf32> to vector<8x96xf32>
    %cst_17 = arith.constant dense<0.000000e+00> : vector<8x96xf32>
    %88 = tpu.matmul %85, %2, %cst_17 {dimension_numbers = #tpu.dot_dimension_numbers<[1], [0], [0], [1], [0, 0, 1, 1], [], []>} : vector<8x32xf32>, vector<32x96xf32>, vector<8x96xf32> -> vector<8x96xf32>
    %89 = arith.addf %88, %12 : vector<8x96xf32>
    %90 = vector.extract_strided_slice %87 {offsets = [0, 0], sizes = [8, 64], strides = [1, 1]} : vector<8x96xf32> to vector<8x64xf32>
    %91 = vector.extract_strided_slice %89 {offsets = [0, 0], sizes = [8, 64], strides = [1, 1]} : vector<8x96xf32> to vector<8x64xf32>
    %92 = arith.addf %90, %91 : vector<8x64xf32>
    %93 = arith.negf %92 : vector<8x64xf32>
    %94 = math.exp %93 : vector<8x64xf32>
    %cst_18 = arith.constant 1.000000e+00 : f32
    %95 = vector.broadcast %cst_18 : f32 to vector<8x64xf32>
    %96 = arith.addf %95, %94 : vector<8x64xf32>
    %97 = arith.divf %95, %96 : vector<8x64xf32>
    %98 = vector.extract_strided_slice %97 {offsets = [0, 0], sizes = [8, 32], strides = [1, 1]} : vector<8x64xf32> to vector<8x32xf32>
    %99 = vector.extract_strided_slice %97 {offsets = [0, 32], sizes = [8, 32], strides = [1, 1]} : vector<8x64xf32> to vector<8x32xf32>
    %100 = vector.extract_strided_slice %87 {offsets = [0, 64], sizes = [8, 32], strides = [1, 1]} : vector<8x96xf32> to vector<8x32xf32>
    %101 = vector.extract_strided_slice %89 {offsets = [0, 64], sizes = [8, 32], strides = [1, 1]} : vector<8x96xf32> to vector<8x32xf32>
    %102 = arith.mulf %98, %101 : vector<8x32xf32>
    %103 = arith.addf %100, %102 : vector<8x32xf32>
    %104 = math.tanh %103 : vector<8x32xf32>
    %cst_19 = arith.constant 1.000000e+00 : f32
    %105 = vector.broadcast %cst_19 : f32 to vector<8x32xf32>
    %106 = arith.subf %105, %99 : vector<8x32xf32>
    %107 = arith.mulf %106, %104 : vector<8x32xf32>
    %108 = arith.mulf %99, %85 : vector<8x32xf32>
    %109 = arith.addf %107, %108 : vector<8x32xf32>
    %110 = vector.extract_strided_slice %10 {offsets = [4, 0, 0], sizes = [1, 8, 96], strides = [1, 1, 1]} : vector<8x8x96xf32> to vector<1x8x96xf32>
    %111 = vector.shape_cast %110 : vector<1x8x96xf32> to vector<8x96xf32>
    %cst_20 = arith.constant dense<0.000000e+00> : vector<8x96xf32>
    %112 = tpu.matmul %109, %2, %cst_20 {dimension_numbers = #tpu.dot_dimension_numbers<[1], [0], [0], [1], [0, 0, 1, 1], [], []>} : vector<8x32xf32>, vector<32x96xf32>, vector<8x96xf32> -> vector<8x96xf32>
    %113 = arith.addf %112, %12 : vector<8x96xf32>
    %114 = vector.extract_strided_slice %111 {offsets = [0, 0], sizes = [8, 64], strides = [1, 1]} : vector<8x96xf32> to vector<8x64xf32>
    %115 = vector.extract_strided_slice %113 {offsets = [0, 0], sizes = [8, 64], strides = [1, 1]} : vector<8x96xf32> to vector<8x64xf32>
    %116 = arith.addf %114, %115 : vector<8x64xf32>
    %117 = arith.negf %116 : vector<8x64xf32>
    %118 = math.exp %117 : vector<8x64xf32>
    %cst_21 = arith.constant 1.000000e+00 : f32
    %119 = vector.broadcast %cst_21 : f32 to vector<8x64xf32>
    %120 = arith.addf %119, %118 : vector<8x64xf32>
    %121 = arith.divf %119, %120 : vector<8x64xf32>
    %122 = vector.extract_strided_slice %121 {offsets = [0, 0], sizes = [8, 32], strides = [1, 1]} : vector<8x64xf32> to vector<8x32xf32>
    %123 = vector.extract_strided_slice %121 {offsets = [0, 32], sizes = [8, 32], strides = [1, 1]} : vector<8x64xf32> to vector<8x32xf32>
    %124 = vector.extract_strided_slice %111 {offsets = [0, 64], sizes = [8, 32], strides = [1, 1]} : vector<8x96xf32> to vector<8x32xf32>
    %125 = vector.extract_strided_slice %113 {offsets = [0, 64], sizes = [8, 32], strides = [1, 1]} : vector<8x96xf32> to vector<8x32xf32>
    %126 = arith.mulf %122, %125 : vector<8x32xf32>
    %127 = arith.addf %124, %126 : vector<8x32xf32>
    %128 = math.tanh %127 : vector<8x32xf32>
    %cst_22 = arith.constant 1.000000e+00 : f32
    %129 = vector.broadcast %cst_22 : f32 to vector<8x32xf32>
    %130 = arith.subf %129, %123 : vector<8x32xf32>
    %131 = arith.mulf %130, %128 : vector<8x32xf32>
    %132 = arith.mulf %123, %109 : vector<8x32xf32>
    %133 = arith.addf %131, %132 : vector<8x32xf32>
    %134 = vector.extract_strided_slice %10 {offsets = [5, 0, 0], sizes = [1, 8, 96], strides = [1, 1, 1]} : vector<8x8x96xf32> to vector<1x8x96xf32>
    %135 = vector.shape_cast %134 : vector<1x8x96xf32> to vector<8x96xf32>
    %cst_23 = arith.constant dense<0.000000e+00> : vector<8x96xf32>
    %136 = tpu.matmul %133, %2, %cst_23 {dimension_numbers = #tpu.dot_dimension_numbers<[1], [0], [0], [1], [0, 0, 1, 1], [], []>} : vector<8x32xf32>, vector<32x96xf32>, vector<8x96xf32> -> vector<8x96xf32>
    %137 = arith.addf %136, %12 : vector<8x96xf32>
    %138 = vector.extract_strided_slice %135 {offsets = [0, 0], sizes = [8, 64], strides = [1, 1]} : vector<8x96xf32> to vector<8x64xf32>
    %139 = vector.extract_strided_slice %137 {offsets = [0, 0], sizes = [8, 64], strides = [1, 1]} : vector<8x96xf32> to vector<8x64xf32>
    %140 = arith.addf %138, %139 : vector<8x64xf32>
    %141 = arith.negf %140 : vector<8x64xf32>
    %142 = math.exp %141 : vector<8x64xf32>
    %cst_24 = arith.constant 1.000000e+00 : f32
    %143 = vector.broadcast %cst_24 : f32 to vector<8x64xf32>
    %144 = arith.addf %143, %142 : vector<8x64xf32>
    %145 = arith.divf %143, %144 : vector<8x64xf32>
    %146 = vector.extract_strided_slice %145 {offsets = [0, 0], sizes = [8, 32], strides = [1, 1]} : vector<8x64xf32> to vector<8x32xf32>
    %147 = vector.extract_strided_slice %145 {offsets = [0, 32], sizes = [8, 32], strides = [1, 1]} : vector<8x64xf32> to vector<8x32xf32>
    %148 = vector.extract_strided_slice %135 {offsets = [0, 64], sizes = [8, 32], strides = [1, 1]} : vector<8x96xf32> to vector<8x32xf32>
    %149 = vector.extract_strided_slice %137 {offsets = [0, 64], sizes = [8, 32], strides = [1, 1]} : vector<8x96xf32> to vector<8x32xf32>
    %150 = arith.mulf %146, %149 : vector<8x32xf32>
    %151 = arith.addf %148, %150 : vector<8x32xf32>
    %152 = math.tanh %151 : vector<8x32xf32>
    %cst_25 = arith.constant 1.000000e+00 : f32
    %153 = vector.broadcast %cst_25 : f32 to vector<8x32xf32>
    %154 = arith.subf %153, %147 : vector<8x32xf32>
    %155 = arith.mulf %154, %152 : vector<8x32xf32>
    %156 = arith.mulf %147, %133 : vector<8x32xf32>
    %157 = arith.addf %155, %156 : vector<8x32xf32>
    %158 = vector.extract_strided_slice %10 {offsets = [6, 0, 0], sizes = [1, 8, 96], strides = [1, 1, 1]} : vector<8x8x96xf32> to vector<1x8x96xf32>
    %159 = vector.shape_cast %158 : vector<1x8x96xf32> to vector<8x96xf32>
    %cst_26 = arith.constant dense<0.000000e+00> : vector<8x96xf32>
    %160 = tpu.matmul %157, %2, %cst_26 {dimension_numbers = #tpu.dot_dimension_numbers<[1], [0], [0], [1], [0, 0, 1, 1], [], []>} : vector<8x32xf32>, vector<32x96xf32>, vector<8x96xf32> -> vector<8x96xf32>
    %161 = arith.addf %160, %12 : vector<8x96xf32>
    %162 = vector.extract_strided_slice %159 {offsets = [0, 0], sizes = [8, 64], strides = [1, 1]} : vector<8x96xf32> to vector<8x64xf32>
    %163 = vector.extract_strided_slice %161 {offsets = [0, 0], sizes = [8, 64], strides = [1, 1]} : vector<8x96xf32> to vector<8x64xf32>
    %164 = arith.addf %162, %163 : vector<8x64xf32>
    %165 = arith.negf %164 : vector<8x64xf32>
    %166 = math.exp %165 : vector<8x64xf32>
    %cst_27 = arith.constant 1.000000e+00 : f32
    %167 = vector.broadcast %cst_27 : f32 to vector<8x64xf32>
    %168 = arith.addf %167, %166 : vector<8x64xf32>
    %169 = arith.divf %167, %168 : vector<8x64xf32>
    %170 = vector.extract_strided_slice %169 {offsets = [0, 0], sizes = [8, 32], strides = [1, 1]} : vector<8x64xf32> to vector<8x32xf32>
    %171 = vector.extract_strided_slice %169 {offsets = [0, 32], sizes = [8, 32], strides = [1, 1]} : vector<8x64xf32> to vector<8x32xf32>
    %172 = vector.extract_strided_slice %159 {offsets = [0, 64], sizes = [8, 32], strides = [1, 1]} : vector<8x96xf32> to vector<8x32xf32>
    %173 = vector.extract_strided_slice %161 {offsets = [0, 64], sizes = [8, 32], strides = [1, 1]} : vector<8x96xf32> to vector<8x32xf32>
    %174 = arith.mulf %170, %173 : vector<8x32xf32>
    %175 = arith.addf %172, %174 : vector<8x32xf32>
    %176 = math.tanh %175 : vector<8x32xf32>
    %cst_28 = arith.constant 1.000000e+00 : f32
    %177 = vector.broadcast %cst_28 : f32 to vector<8x32xf32>
    %178 = arith.subf %177, %171 : vector<8x32xf32>
    %179 = arith.mulf %178, %176 : vector<8x32xf32>
    %180 = arith.mulf %171, %157 : vector<8x32xf32>
    %181 = arith.addf %179, %180 : vector<8x32xf32>
    %182 = vector.extract_strided_slice %10 {offsets = [7, 0, 0], sizes = [1, 8, 96], strides = [1, 1, 1]} : vector<8x8x96xf32> to vector<1x8x96xf32>
    %183 = vector.shape_cast %182 : vector<1x8x96xf32> to vector<8x96xf32>
    %cst_29 = arith.constant dense<0.000000e+00> : vector<8x96xf32>
    %184 = tpu.matmul %181, %2, %cst_29 {dimension_numbers = #tpu.dot_dimension_numbers<[1], [0], [0], [1], [0, 0, 1, 1], [], []>} : vector<8x32xf32>, vector<32x96xf32>, vector<8x96xf32> -> vector<8x96xf32>
    %185 = arith.addf %184, %12 : vector<8x96xf32>
    %186 = vector.extract_strided_slice %183 {offsets = [0, 0], sizes = [8, 64], strides = [1, 1]} : vector<8x96xf32> to vector<8x64xf32>
    %187 = vector.extract_strided_slice %185 {offsets = [0, 0], sizes = [8, 64], strides = [1, 1]} : vector<8x96xf32> to vector<8x64xf32>
    %188 = arith.addf %186, %187 : vector<8x64xf32>
    %189 = arith.negf %188 : vector<8x64xf32>
    %190 = math.exp %189 : vector<8x64xf32>
    %cst_30 = arith.constant 1.000000e+00 : f32
    %191 = vector.broadcast %cst_30 : f32 to vector<8x64xf32>
    %192 = arith.addf %191, %190 : vector<8x64xf32>
    %193 = arith.divf %191, %192 : vector<8x64xf32>
    %194 = vector.extract_strided_slice %193 {offsets = [0, 0], sizes = [8, 32], strides = [1, 1]} : vector<8x64xf32> to vector<8x32xf32>
    %195 = vector.extract_strided_slice %193 {offsets = [0, 32], sizes = [8, 32], strides = [1, 1]} : vector<8x64xf32> to vector<8x32xf32>
    %196 = vector.extract_strided_slice %183 {offsets = [0, 64], sizes = [8, 32], strides = [1, 1]} : vector<8x96xf32> to vector<8x32xf32>
    %197 = vector.extract_strided_slice %185 {offsets = [0, 64], sizes = [8, 32], strides = [1, 1]} : vector<8x96xf32> to vector<8x32xf32>
    %198 = arith.mulf %194, %197 : vector<8x32xf32>
    %199 = arith.addf %196, %198 : vector<8x32xf32>
    %200 = math.tanh %199 : vector<8x32xf32>
    %cst_31 = arith.constant 1.000000e+00 : f32
    %201 = vector.broadcast %cst_31 : f32 to vector<8x32xf32>
    %202 = arith.subf %201, %195 : vector<8x32xf32>
    %203 = arith.mulf %202, %200 : vector<8x32xf32>
    %204 = arith.mulf %195, %181 : vector<8x32xf32>
    %205 = arith.addf %203, %204 : vector<8x32xf32>
    %cst_32 = arith.constant 0.000000e+00 : f32
    %206 = vector.broadcast %cst_32 : f32 to vector<8x32xf32>
    %207 = arith.maximumf %205, %206 : vector<8x32xf32>
    %c64 = arith.constant 64 : index
    %c0_33 = arith.constant 0 : index
    %208 = vector.load %arg3[%c64, %c0_33] : memref<264x128xf32, #tpu.memory_space<vmem>>, vector<8x32xf32>
    %c72 = arith.constant 72 : index
    %c0_34 = arith.constant 0 : index
    %209 = vector.load %arg3[%c72, %c0_34] : memref<264x128xf32, #tpu.memory_space<vmem>>, vector<1x32xf32>
    %c80 = arith.constant 80 : index
    %c0_35 = arith.constant 0 : index
    %210 = vector.load %arg3[%c80, %c0_35] : memref<264x128xf32, #tpu.memory_space<vmem>>, vector<32x32xf32>
    %c112 = arith.constant 112 : index
    %c0_36 = arith.constant 0 : index
    %211 = vector.load %arg3[%c112, %c0_36] : memref<264x128xf32, #tpu.memory_space<vmem>>, vector<1x32xf32>
    %c0_37 = arith.constant 0 : index
    %c0_38 = arith.constant 0 : index
    %212 = vector.load %arg2[%c0_37, %c0_38] : memref<8x8xf32, #tpu.memory_space<vmem>>, vector<8x8xf32>
    %cst_39 = arith.constant dense<0.000000e+00> : vector<8x32xf32>
    %213 = tpu.matmul %212, %208, %cst_39 {dimension_numbers = #tpu.dot_dimension_numbers<[1], [0], [0], [1], [0, 0, 1, 1], [], []>} : vector<8x8xf32>, vector<8x32xf32>, vector<8x32xf32> -> vector<8x32xf32>
    %214 = vector.broadcast %209 : vector<1x32xf32> to vector<8x32xf32>
    %215 = arith.addf %213, %214 : vector<8x32xf32>
    %cst_40 = arith.constant dense<0.000000e+00> : vector<8x32xf32>
    %216 = tpu.matmul %215, %210, %cst_40 {dimension_numbers = #tpu.dot_dimension_numbers<[1], [0], [0], [1], [0, 0, 1, 1], [], []>} : vector<8x32xf32>, vector<32x32xf32>, vector<8x32xf32> -> vector<8x32xf32>
    %217 = vector.broadcast %211 : vector<1x32xf32> to vector<8x32xf32>
    %218 = arith.addf %216, %217 : vector<8x32xf32>
    %cst_41 = arith.constant 0.000000e+00 : f32
    %219 = vector.broadcast %cst_41 : f32 to vector<8x32xf32>
    %220 = arith.maximumf %218, %219 : vector<8x32xf32>
    %c120 = arith.constant 120 : index
    %c0_42 = arith.constant 0 : index
    %221 = vector.load %arg3[%c120, %c0_42] : memref<264x128xf32, #tpu.memory_space<vmem>>, vector<32x64xf32>
    %c152 = arith.constant 152 : index
    %c0_43 = arith.constant 0 : index
    %222 = vector.load %arg3[%c152, %c0_43] : memref<264x128xf32, #tpu.memory_space<vmem>>, vector<32x64xf32>
    %c184 = arith.constant 184 : index
    %c0_44 = arith.constant 0 : index
    %223 = vector.load %arg3[%c184, %c0_44] : memref<264x128xf32, #tpu.memory_space<vmem>>, vector<1x64xf32>
    %cst_45 = arith.constant dense<0.000000e+00> : vector<8x64xf32>
    %224 = tpu.matmul %207, %221, %cst_45 {dimension_numbers = #tpu.dot_dimension_numbers<[1], [0], [0], [1], [0, 0, 1, 1], [], []>} : vector<8x32xf32>, vector<32x64xf32>, vector<8x64xf32> -> vector<8x64xf32>
    %cst_46 = arith.constant dense<0.000000e+00> : vector<8x64xf32>
    %225 = tpu.matmul %220, %222, %cst_46 {dimension_numbers = #tpu.dot_dimension_numbers<[1], [0], [0], [1], [0, 0, 1, 1], [], []>} : vector<8x32xf32>, vector<32x64xf32>, vector<8x64xf32> -> vector<8x64xf32>
    %226 = arith.addf %224, %225 : vector<8x64xf32>
    %227 = vector.broadcast %223 : vector<1x64xf32> to vector<8x64xf32>
    %228 = arith.addf %226, %227 : vector<8x64xf32>
    %cst_47 = arith.constant 0.000000e+00 : f32
    %229 = vector.broadcast %cst_47 : f32 to vector<8x64xf32>
    %230 = arith.maximumf %228, %229 : vector<8x64xf32>
    %c192 = arith.constant 192 : index
    %c0_48 = arith.constant 0 : index
    %231 = vector.load %arg3[%c192, %c0_48] : memref<264x128xf32, #tpu.memory_space<vmem>>, vector<64x128xf32>
    %c256 = arith.constant 256 : index
    %c0_49 = arith.constant 0 : index
    %232 = vector.load %arg3[%c256, %c0_49] : memref<264x128xf32, #tpu.memory_space<vmem>>, vector<1x128xf32>
    %cst_50 = arith.constant dense<0.000000e+00> : vector<8x128xf32>
    %233 = tpu.matmul %230, %231, %cst_50 {dimension_numbers = #tpu.dot_dimension_numbers<[1], [0], [0], [1], [0, 0, 1, 1], [], []>} : vector<8x64xf32>, vector<64x128xf32>, vector<8x128xf32> -> vector<8x128xf32>
    %234 = vector.broadcast %232 : vector<1x128xf32> to vector<8x128xf32>
    %235 = arith.addf %233, %234 : vector<8x128xf32>
    %c0_51 = arith.constant 0 : index
    %c0_52 = arith.constant 0 : index
    %236 = vector.load %arg4[%c0_51, %c0_52] : memref<8x128xf32, #tpu.memory_space<vmem>>, vector<8x128xf32>
    tpu.vector_store %arg4[%c0_51, %c0_52], %235 {strides = array<i32>} : memref<8x128xf32, #tpu.memory_space<vmem>>, vector<8x128xf32>,
    return
  }
  func.func @transform_0(%arg0: i32) -> (i32, i32, i32) {
    %c0_i32 = arith.constant 0 : i32
    %c0_i32_0 = arith.constant 0 : i32
    %c0_i32_1 = arith.constant 0 : i32
    return %c0_i32, %arg0, %c0_i32_0 : i32, i32, i32
  }
  func.func @transform_1(%arg0: i32) -> (i32, i32) {
    %c0_i32 = arith.constant 0 : i32
    %c0_i32_0 = arith.constant 0 : i32
    return %arg0, %c0_i32 : i32, i32
  }
  func.func @transform_2(%arg0: i32) -> (i32, i32) {
    %c0_i32 = arith.constant 0 : i32
    %c0_i32_0 = arith.constant 0 : i32
    %c0_i32_1 = arith.constant 0 : i32
    return %c0_i32, %c0_i32_0 : i32, i32
  }
  func.func @transform_3(%arg0: i32) -> (i32, i32) {
    %c0_i32 = arith.constant 0 : i32
    %c0_i32_0 = arith.constant 0 : i32
    return %arg0, %c0_i32 : i32, i32
  }
}

</mosaic_0001>

<bundles_post_ra>
// kernel: tpu_custom_call.1
= control target key start
LH: loop header
LB: loop body
LE: loop exit
PB: predicated region body
PF: predicated region fallthrough
CT: control target
= control target key end

     0   :  { %8 = vsyncpa [#allocation3], 0  ;;  %s1183_s0 = inlined_call_operand.hbm [shape: f32[8,8,16], index: 0, kind: input, shape index: {}]   ;;  %s1184_s1 = inlined_call_operand.hbm [shape: f32[8,8], index: 1, kind: input, shape index: {}]   ;;  %s1185_s2 = inlined_call_operand.hbm [shape: f32[264,128], index: 2, kind: input, shape index: {}]   ;;  %s1186_s3 = inlined_call_operand.hbm [shape: f32[8,128], index: 3, kind: output, shape index: {}]  }
   0x1   :  { %9 = vsyncpa [#allocation6], 0  ;;  %s29_s14 = sshll.u32 %s1184_s1, 4  ;;  %s30_s14 = int_to_ptr.hbm [resolvable:$true] %s29_s14 }
   0x2   :  { %10 = vsyncpa [#allocation4], 0  ;;  %s1022_s15 = smov [#allocation5]   ;;  %s15_s19 = sshll.u32 %s1183_s0, 4  ;;  %s16_s19 = int_to_ptr.hbm [resolvable:$true] %s15_s19 }
   0x3   :  { %s31_s16 = sshll.u32 %s1022_s15, 4  ;;  %s1023_s20 = smov [#allocation2]   ;;  %s32_s16 = int_to_ptr.vmem [resolvable:$true] %s31_s16 }
   0x4   :  { %34 = dma.hbm_to_vmem [thread:$0]  %s30_s14, 128, %s32_s16, [#allocation6]  }
   0x5   :  { %s17_s21 = sshll.u32 %s1023_s20, 4  ;;  %s1024_s22 = smov 128   ;;  %s18_s21 = int_to_ptr.vmem [resolvable:$true] %s17_s21 }
   0x6   :  { %s1025_s23 = smov 8   ;;  %s39_s1 = sshll.u32 %s1185_s2, 4  ;;  %s40_s1 = int_to_ptr.hbm [resolvable:$true] %s39_s1 }
   0x7   :  { %23 = dma.hbm_to_vmem [thread:$0]  %s16_s19, 1024, %s18_s21, [#allocation3], %s1024_s22, %s1024_s22, %s1025_s23  }
   0x8   :  { %s1026_s26 = smov [#allocation7]  }
   0x9   :  { %s41_s27 = sshll.u32 %s1026_s26, 4  ;;  %s42_s27 = int_to_ptr.vmem [resolvable:$true] %s41_s27 }
   0xa   :  { %47 = dma.hbm_to_vmem [thread:$0]  %s40_s1, 4224, %s42_s27, [#allocation6], %s1024_s22, %s1024_s22, %s1025_s23  }
   0xb   :  { %1016 = dma.done.wait [#allocation3], 1024  }
   0xc   :  { %1017 = vsyncadd [#allocation3], 4294966272 }
   0xd   :  { %1018 = dma.done.wait [#allocation6], 4352  }
   0xe   :  { %1019 = vsyncadd [#allocation6], 4294962944  ;;  %v1060_v0 = vld [vmem:[#allocation7 + $0x30] sm:$0xff]  ;;  %v1062_v1 = vld [vmem:[#allocation7 + $0x28] sm:$0xff]  ;;  %vm77_vm0 = vcmask 130048   ;;  %v1027_v7 = vmov 0.0  }
   0xf   :  { %160 = vmatpush.msra.mxu3 %v1060_v0  ;;  %v61_v2 = vld [vmem:[#allocation7 + $0x8] sm:$0xff]  ;;  %v60_v3 = vld [vmem:[#allocation7] sm:$0xff]  ;;  %352 = vmatpush.msra.mxu1 %v1060_v0  ;;  %v68_v5 = vld [vmem:[#allocation2] sm:$0xff]  ;;  %s1028_s0 = smov 64   ;;  %s1029_s2 = smov 96   ;;  %vm144_vm5 = vcmask 261120  }
  0x10   :  { %v1066_v4 = vld [vmem:[#allocation7 + $0x20] sm:$0xff]  ;;  %116 = vmatpush.msra.mxu0 %v61_v2  ;;  %855 = vmatpush.msra.mxu2 %v61_v2  ;;  %v1070_v6 = vld [vmem:[#allocation7 + $0x18] sm:$0xff]  ;;  %v1097_v11 = vld [vmem:[#allocation7 + $0x10] ss:$0 sm:$0xff]  ;;  %s1030_s28 = smov [#allocation8]   ;;  %s816_s5 = sshll.u32 %s1186_s3, 4  ;;  %s817_s5 = int_to_ptr.hbm [resolvable:$true] %s816_s5 }
  0x11   :  { %161 = vmatpush.msra.mxu3 %v1062_v1  ;;  %353 = vmatpush.msra.mxu1 %v1062_v1  ;;  %v1093_v8 = vld [vmem:[#allocation7 + $0x38] ss:$0 sm:$0xff]  ;;  %v74_v33 = vld [vmem:[#allocation2 + $0x30] sm:$0xff]  ;;  %v75_v34 = vld [vmem:[#allocation2 + $0x38] sm:$0xff]  ;;  %s814_s29 = sshll.u32 %s1030_s28, 4  ;;  %s815_s29 = int_to_ptr.vmem [resolvable:$true] %s814_s29 }
  0x12   :  { %117 = vmatpush.msra.mxu0 %v60_v3  ;;  %856 = vmatpush.msra.mxu2 %v60_v3  ;;  %v69_v40 = vld [vmem:[#allocation2 + $0x8] sm:$0xff] }
  0x13   :  { %162 = vmatpush.msra.mxu3 %v1066_v4  ;;  %827 = vmatmul.msk.f32.vlgmr.msra.gmra.mxu0 %vm77_vm0, %v68_v5 }
  0x14   :  { %224 = vmatpush.msrb.mxu2 %v1060_v0  ;;  %354 = vmatpush.msra.mxu1 %v1066_v4 }
  0x15   :  { %163 = vmatpush.msra.mxu3 %v1070_v6  ;;  %833 = vmatmul.msk.f32.vlgmr.msra.gmra.mxu2 %vm77_vm0, %v74_v33 }
  0x16   :  { %164 = vmatmul.f32.vlgmr.msra.gmra.mxu3 %v1027_v7  ;;  %225 = vmatpush.msrb.mxu2 %v1062_v1 }
  0x17   :  { %288 = vmatpush.msrb.mxu3 %v1060_v0  ;;  %355 = vmatpush.msra.mxu1 %v1070_v6 }
  0x18   :  { %226 = vmatpush.msrb.mxu2 %v1066_v4 }
  0x19   :  { %544 = vmatpush.msrb.mxu1 %v1060_v0  ;;  %289 = vmatpush.msrb.mxu3 %v1062_v1 }
  0x1a   :  { %227 = vmatpush.msrb.mxu2 %v1070_v6 }
  0x1b   :  { %545 = vmatpush.msrb.mxu1 %v1062_v1  ;;  %290 = vmatpush.msrb.mxu3 %v1066_v4 }
  0x1c   :  { %416 = vmatpush.msra.mxu2 %v1060_v0  ;;  %828 = vmatmul.msk.f32.gmra.mxu0 %vm77_vm0, %v69_v40  ;;  %v71_v40 = vld [vmem:[#allocation2 + $0x18] sm:$0xff] }
  0x1d   :  { %546 = vmatpush.msrb.mxu1 %v1066_v4  ;;  %291 = vmatpush.msrb.mxu3 %v1070_v6 }
  0x1e   :  { %417 = vmatpush.msra.mxu2 %v1062_v1 }
  0x1f   :  { %480 = vmatpush.msra.mxu3 %v1060_v0  ;;  %547 = vmatpush.msrb.mxu1 %v1070_v6 }
  0x20   :  { %418 = vmatpush.msra.mxu2 %v1066_v4 }
  0x21   :  { %481 = vmatpush.msra.mxu3 %v1062_v1  ;;  %834 = vmatmul.msk.f32.gmra.mxu2 %vm77_vm0, %v75_v34 }
  0x22   :  { %419 = vmatpush.msra.mxu2 %v1070_v6 }
  0x23   :  { %482 = vmatpush.msra.mxu3 %v1066_v4 }
  0x25   :  { %483 = vmatpush.msra.mxu3 %v1070_v6 }
  0x90   :  { %v119_v12 = vpop.f32.mrf.mxu0 }
  0x91   :  { %v120_v13 = vadd.f32 %v1097_v11, %v119_v12 }
  0x98   :  { %v1115_v42 = vpop.f32.mrf.mxu2 }
  0x99   :  { %v165_v9 = vpop.f32.mrf.mxu3  ;;  %v122_v46 = vpop.f32.mrf.mxu0 }
  0x9a   :  { %v166_v10 = vadd.f32 %v1093_v8, %v165_v9  ;;  %v123_v47 = vadd.f32 %v1097_v11, %v122_v46  ;;  %v70_v9 = vld [vmem:[#allocation2 + $0x10] sm:$0xff] }
  0x9b   :  { %829 = vmatmul.msk.f32.gmra.mxu0 %vm77_vm0, %v70_v9  ;;  %v72_v9 = vld [vmem:[#allocation2 + $0x20] sm:$0xff] }
  0x9c   :  { %189 = vrot.lane.b32.xlu0 %v166_v10, %s1028_s0  ;;  %v168_v14 = vadd.f32 %v166_v10, %v120_v13 }
  0x9e   :  { %v835_v15 = vmul.f32 -1.442695, %v168_v14 }
  0xa0   :  { %872 = vpow2.f32 %v835_v15 }
  0xa3   :  { %830 = vmatmul.msk.f32.gmra.mxu0 %vm77_vm0, %v71_v40  ;;  %v73_v40 = vld [vmem:[#allocation2 + $0x28] sm:$0xff] }
  0xa4   :  { %v1117_v43 = vpop.f32.mrf.mxu2 }
  0xa6   :  { %v873_v16 = vpop.eup %872 }
  0xa7   :  { %v172_v17 = vadd.f32 1.0, %v873_v16 }
  0xa9   :  { %874 = vrcp.f32 %v172_v17  ;;  %v184_v23 = vand.u32 2147483648, %v172_v17  ;;  %vm178_vm2 = vweird.f32 %v172_v17  ;;  %v182_v24 = vand.u32 2147483647, %v172_v17 }
  0xab   :  { %v185_v26 = vor.u32 1.1754944e-38, %v184_v23  ;;  %vm183_vm4 = vcmp.eq.f32.partialorder %v182_v24, 8.507059e+37  ;;  %831 = vmatmul.msk.f32.gmra.mxu0 %vm77_vm0, %v72_v9 }
  0xaf   :  { %v875_v18 = vpop.eup %874 }
  0xb0   :  { %v174_v19 = vmul.f32 %v875_v18, %v172_v17  ;;  %vm179_vm1 = vweird.f32 %v875_v18 }
  0xb1   :  { %vm180_vm3 = vmor %vm178_vm2, %vm179_vm1 }
  0xb2   :  { %v175_v20 = vsub.f32 1.0, %v174_v19 }
  0xb3   :  { %832 = vmatmul.msk.f32.gmra.mxu0 %vm77_vm0, %v73_v40  ;;  %v141_v40 = vadd.f32 %v1097_v11, %v1117_v43 }
  0xb4   :  { %v176_v21 = vmul.f32 %v875_v18, %v175_v20 }
  0xb6   :  { %v177_v22 = vadd.f32 %v875_v18, %v176_v21 }
  0xb8   :  { %v181_v25 = vsel %vm180_vm3, %v875_v18, %v177_v22 }
  0xb9   :  { %v186_v28 = vsel %vm183_vm4, %v185_v26, %v181_v25 }
  0xba   :  { %v199_v35 = vsub.f32 1.0, %v186_v28  ;;  %v205_v37 = vmul.f32 0.0, %v186_v28 }
 0x10e   :  { %v190_v27 = vpop.permute.xlu0 %189 }
 0x10f   :  { %v192_v29 = vmul.f32 %v190_v27, %v186_v28 }
 0x111   :  { %194 = vrot.lane.b32.xlu0 %v192_v29, %s1028_s0 }
 0x118   :  { %v125_v14 = vpop.f32.mrf.mxu0 }
 0x119   :  { %v126_v15 = vadd.f32 %v1097_v11, %v125_v14 }
 0x120   :  { %v128_v46 = vpop.f32.mrf.mxu0 }
 0x128   :  { %v131_v14 = vpop.f32.mrf.mxu0 }
 0x183   :  { %v195_v30 = vpop.permute.xlu0 %194 }
 0x184   :  { %v197_v31 = vadd.f32 %v195_v30, %v120_v13 }
 0x186   :  { %876 = vtanh.f32 %v197_v31 }
 0x18c   :  { %v877_v32 = vpop.eup %876 }
 0x18d   :  { %201 = vrot.lane.b32.xlu1 %v877_v32, %s1029_s2 }
 0x1ff   :  { %v202_v36 = vpop.permute.xlu1 %201 }
 0x200   :  { %v204_v38 = vmul.f32 %v202_v36, %v199_v35 }
 0x202   :  { %v206_v39 = vadd.f32 %v205_v37, %v204_v38 }
 0x204   :  { %208 = vrot.lane.b32.xlu1 %v206_v39, %s1029_s2 }
 0x276   :  { %v209_v41 = vpop.permute.xlu1 %208 }
 0x277   :  { %836 = vmatmul.msk.f32.vlgmr.msrb.gmra.mxu2 %vm144_vm5, %v209_v41 }
 0x278   :  { %608 = vmatpush.msrb.mxu2 %v1060_v0 }
 0x27a   :  { %609 = vmatpush.msrb.mxu2 %v1062_v1 }
 0x27c   :  { %610 = vmatpush.msrb.mxu2 %v1066_v4 }
 0x27e   :  { %611 = vmatpush.msrb.mxu2 %v1070_v6 }
 0x2fa   :  { %v229_v44 = vpop.f32.mrf.mxu2 }
 0x2fb   :  { %v230_v45 = vadd.f32 %v1093_v8, %v229_v44 }
 0x2fd   :  { %253 = vrot.lane.b32.xlu2 %v230_v45, %s1028_s0  ;;  %v232_v48 = vadd.f32 %v230_v45, %v123_v47 }
 0x2ff   :  { %v837_v49 = vmul.f32 -1.442695, %v232_v48 }
 0x301   :  { %878 = vpow2.f32 %v837_v49 }
 0x307   :  { %v879_v50 = vpop.eup %878 }
 0x308   :  { %v236_v51 = vadd.f32 1.0, %v879_v50 }
 0x30a   :  { %880 = vrcp.f32 %v236_v51  ;;  %v248_v57 = vand.u32 2147483648, %v236_v51  ;;  %vm242_vm7 = vweird.f32 %v236_v51  ;;  %v246_v58 = vand.u32 2147483647, %v236_v51 }
 0x30c   :  { %v249_v60 = vor.u32 1.1754944e-38, %v248_v57  ;;  %vm247_vm9 = vcmp.eq.f32.partialorder %v246_v58, 8.507059e+37 }
 0x310   :  { %v881_v52 = vpop.eup %880 }
 0x311   :  { %v238_v53 = vmul.f32 %v881_v52, %v236_v51  ;;  %vm243_vm6 = vweird.f32 %v881_v52 }
 0x312   :  { %vm244_vm8 = vmor %vm242_vm7, %vm243_vm6 }
 0x313   :  { %v239_v54 = vsub.f32 1.0, %v238_v53 }
 0x315   :  { %v240_v55 = vmul.f32 %v881_v52, %v239_v54 }
 0x317   :  { %v241_v56 = vadd.f32 %v881_v52, %v240_v55 }
 0x319   :  { %v245_v59 = vsel %vm244_vm8, %v881_v52, %v241_v56 }
 0x31a   :  { %v250_v62 = vsel %vm247_vm9, %v249_v60, %v245_v59 }
 0x31b   :  { %v263_v3 = vsub.f32 1.0, %v250_v62  ;;  %v269_v5 = vmul.f32 %v250_v62, %v206_v39 }
 0x357   :  { %v254_v61 = vpop.permute.xlu2 %253 }
 0x358   :  { %v256_v63 = vmul.f32 %v254_v61, %v250_v62 }
 0x35a   :  { %258 = vrot.lane.b32.xlu2 %v256_v63, %s1028_s0 }
 0x3b4   :  { %v259_v0 = vpop.permute.xlu2 %258 }
 0x3b5   :  { %v261_v1 = vadd.f32 %v259_v0, %v123_v47  ;;  %v129_v47 = vadd.f32 %v1097_v11, %v128_v46  ;;  %v134_v46 = vpop.f32.mrf.mxu0 }
 0x3b7   :  { %882 = vtanh.f32 %v261_v1 }
 0x3bd   :  { %v883_v2 = vpop.eup %882 }
 0x3be   :  { %265 = vrot.lane.b32.xlu0 %v883_v2, %s1029_s2 }
 0x430   :  { %v266_v4 = vpop.permute.xlu0 %265 }
 0x431   :  { %v268_v6 = vmul.f32 %v266_v4, %v263_v3 }
 0x433   :  { %v270_v7 = vadd.f32 %v269_v5, %v268_v6 }
 0x435   :  { %272 = vrot.lane.b32.xlu1 %v270_v7, %s1029_s2 }
 0x4a7   :  { %v273_v10 = vpop.permute.xlu1 %272 }
 0x4a8   :  { %838 = vmatmul.msk.f32.vlgmr.msrb.gmra.mxu3 %vm144_vm5, %v273_v10 }
 0x52b   :  { %v293_v12 = vpop.f32.mrf.mxu3 }
 0x52c   :  { %v294_v13 = vadd.f32 %v1093_v8, %v293_v12 }
 0x52e   :  { %317 = vrot.lane.b32.xlu2 %v294_v13, %s1028_s0  ;;  %v296_v16 = vadd.f32 %v294_v13, %v126_v15 }
 0x530   :  { %v839_v17 = vmul.f32 -1.442695, %v296_v16 }
 0x532   :  { %884 = vpow2.f32 %v839_v17 }
 0x538   :  { %v885_v18 = vpop.eup %884 }
 0x539   :  { %v300_v19 = vadd.f32 1.0, %v885_v18 }
 0x53b   :  { %886 = vrcp.f32 %v300_v19  ;;  %v312_v25 = vand.u32 2147483648, %v300_v19  ;;  %vm306_vm11 = vweird.f32 %v300_v19  ;;  %v310_v26 = vand.u32 2147483647, %v300_v19 }
 0x53d   :  { %v313_v28 = vor.u32 1.1754944e-38, %v312_v25  ;;  %vm311_vm13 = vcmp.eq.f32.partialorder %v310_v26, 8.507059e+37 }
 0x541   :  { %v887_v20 = vpop.eup %886 }
 0x542   :  { %v302_v21 = vmul.f32 %v887_v20, %v300_v19  ;;  %vm307_vm10 = vweird.f32 %v887_v20 }
 0x543   :  { %vm308_vm12 = vmor %vm306_vm11, %vm307_vm10 }
 0x544   :  { %v303_v22 = vsub.f32 1.0, %v302_v21 }
 0x546   :  { %v304_v23 = vmul.f32 %v887_v20, %v303_v22 }
 0x548   :  { %v305_v24 = vadd.f32 %v887_v20, %v304_v23 }
 0x54a   :  { %v309_v27 = vsel %vm308_vm12, %v887_v20, %v305_v24 }
 0x54b   :  { %v314_v30 = vsel %vm311_vm13, %v313_v28, %v309_v27 }
 0x54c   :  { %v327_v35 = vsub.f32 1.0, %v314_v30  ;;  %v333_v37 = vmul.f32 %v314_v30, %v270_v7 }
 0x588   :  { %v318_v29 = vpop.permute.xlu2 %317 }
 0x589   :  { %v320_v31 = vmul.f32 %v318_v29, %v314_v30 }
 0x58b   :  { %322 = vrot.lane.b32.xlu0 %v320_v31, %s1028_s0 }
 0x5fd   :  { %v323_v32 = vpop.permute.xlu0 %322 }
 0x5fe   :  { %v325_v33 = vadd.f32 %v323_v32, %v126_v15  ;;  %v132_v15 = vadd.f32 %v1097_v11, %v131_v14 }
 0x600   :  { %888 = vtanh.f32 %v325_v33 }
 0x606   :  { %v889_v34 = vpop.eup %888 }
 0x607   :  { %329 = vrot.lane.b32.xlu1 %v889_v34, %s1029_s2 }
 0x679   :  { %v330_v36 = vpop.permute.xlu1 %329 }
 0x67a   :  { %v332_v38 = vmul.f32 %v330_v36, %v327_v35 }
 0x67c   :  { %v334_v39 = vadd.f32 %v333_v37, %v332_v38 }
 0x67e   :  { %336 = vrot.lane.b32.xlu2 %v334_v39, %s1029_s2 }
 0x6d8   :  { %v337_v41 = vpop.permute.xlu2 %336 }
 0x6d9   :  { %840 = vmatmul.msk.f32.vlgmr.msra.gmra.mxu1 %vm144_vm5, %v337_v41 }
 0x756   :  { %v357_v44 = vpop.f32.mrf.mxu1 }
 0x757   :  { %v358_v45 = vadd.f32 %v1093_v8, %v357_v44 }
 0x759   :  { %381 = vrot.lane.b32.xlu0 %v358_v45, %s1028_s0  ;;  %v360_v48 = vadd.f32 %v358_v45, %v129_v47 }
 0x75b   :  { %v841_v49 = vmul.f32 -1.442695, %v360_v48 }
 0x75d   :  { %890 = vpow2.f32 %v841_v49 }
 0x763   :  { %v891_v50 = vpop.eup %890 }
 0x764   :  { %v364_v51 = vadd.f32 1.0, %v891_v50 }
 0x766   :  { %892 = vrcp.f32 %v364_v51  ;;  %v376_v57 = vand.u32 2147483648, %v364_v51  ;;  %vm370_vm15 = vweird.f32 %v364_v51  ;;  %v374_v58 = vand.u32 2147483647, %v364_v51 }
 0x768   :  { %v377_v60 = vor.u32 1.1754944e-38, %v376_v57  ;;  %vm375_vm2 = vcmp.eq.f32.partialorder %v374_v58, 8.507059e+37 }
 0x76c   :  { %v893_v52 = vpop.eup %892 }
 0x76d   :  { %v366_v53 = vmul.f32 %v893_v52, %v364_v51  ;;  %vm371_vm14 = vweird.f32 %v893_v52 }
 0x76e   :  { %vm372_vm1 = vmor %vm370_vm15, %vm371_vm14  ;;  %vm665_vm15 = vcmask 64512  }
 0x76f   :  { %v367_v54 = vsub.f32 1.0, %v366_v53 }
 0x771   :  { %v368_v55 = vmul.f32 %v893_v52, %v367_v54 }
 0x773   :  { %v369_v56 = vadd.f32 %v893_v52, %v368_v55 }
 0x775   :  { %v373_v59 = vsel %vm372_vm1, %v893_v52, %v369_v56 }
 0x776   :  { %v378_v62 = vsel %vm375_vm2, %v377_v60, %v373_v59 }
 0x777   :  { %v391_v3 = vsub.f32 1.0, %v378_v62  ;;  %v397_v5 = vmul.f32 %v378_v62, %v334_v39 }
 0x7cb   :  { %v382_v61 = vpop.permute.xlu0 %381 }
 0x7cc   :  { %v384_v63 = vmul.f32 %v382_v61, %v378_v62 }
 0x7ce   :  { %386 = vrot.lane.b32.xlu1 %v384_v63, %s1028_s0 }
 0x840   :  { %v387_v0 = vpop.permute.xlu1 %386 }
 0x841   :  { %v389_v1 = vadd.f32 %v387_v0, %v129_v47  ;;  %v135_v47 = vadd.f32 %v1097_v11, %v134_v46 }
 0x843   :  { %894 = vtanh.f32 %v389_v1 }
 0x849   :  { %v895_v2 = vpop.eup %894 }
 0x84a   :  { %393 = vrot.lane.b32.xlu2 %v895_v2, %s1029_s2 }
 0x8a4   :  { %v394_v4 = vpop.permute.xlu2 %393 }
 0x8a5   :  { %v396_v6 = vmul.f32 %v394_v4, %v391_v3 }
 0x8a7   :  { %v398_v7 = vadd.f32 %v397_v5, %v396_v6 }
 0x8a9   :  { %400 = vrot.lane.b32.xlu0 %v398_v7, %s1029_s2 }
 0x91b   :  { %v401_v10 = vpop.permute.xlu0 %400 }
 0x91c   :  { %842 = vmatmul.msk.f32.vlgmr.msra.gmra.mxu2 %vm144_vm5, %v401_v10 }
 0x99f   :  { %v421_v12 = vpop.f32.mrf.mxu2 }
 0x9a0   :  { %v422_v13 = vadd.f32 %v1093_v8, %v421_v12 }
 0x9a2   :  { %445 = vrot.lane.b32.xlu1 %v422_v13, %s1028_s0  ;;  %v424_v16 = vadd.f32 %v422_v13, %v132_v15  ;;  %v138_v13 = vadd.f32 %v1097_v11, %v1115_v42 }
 0x9a4   :  { %v843_v17 = vmul.f32 -1.442695, %v424_v16 }
 0x9a6   :  { %896 = vpow2.f32 %v843_v17 }
 0x9ac   :  { %v897_v18 = vpop.eup %896 }
 0x9ad   :  { %v428_v19 = vadd.f32 1.0, %v897_v18 }
 0x9af   :  { %898 = vrcp.f32 %v428_v19  ;;  %v440_v25 = vand.u32 2147483648, %v428_v19  ;;  %vm434_vm4 = vweird.f32 %v428_v19  ;;  %v438_v26 = vand.u32 2147483647, %v428_v19 }
 0x9b1   :  { %v441_v28 = vor.u32 1.1754944e-38, %v440_v25  ;;  %vm439_vm7 = vcmp.eq.f32.partialorder %v438_v26, 8.507059e+37 }
 0x9b5   :  { %v899_v20 = vpop.eup %898 }
 0x9b6   :  { %v430_v21 = vmul.f32 %v899_v20, %v428_v19  ;;  %vm435_vm3 = vweird.f32 %v899_v20 }
 0x9b7   :  { %vm436_vm6 = vmor %vm434_vm4, %vm435_vm3 }
 0x9b8   :  { %v431_v22 = vsub.f32 1.0, %v430_v21 }
 0x9ba   :  { %v432_v23 = vmul.f32 %v899_v20, %v431_v22 }
 0x9bc   :  { %v433_v24 = vadd.f32 %v899_v20, %v432_v23 }
 0x9be   :  { %v437_v27 = vsel %vm436_vm6, %v899_v20, %v433_v24  ;;  %vm784_vm6 = vcmask 523264  }
 0x9bf   :  { %v442_v30 = vsel %vm439_vm7, %v441_v28, %v437_v27 }
 0x9c0   :  { %v455_v35 = vsub.f32 1.0, %v442_v30  ;;  %v461_v37 = vmul.f32 %v442_v30, %v398_v7 }
 0xa14   :  { %v446_v29 = vpop.permute.xlu1 %445 }
 0xa15   :  { %v448_v31 = vmul.f32 %v446_v29, %v442_v30 }
 0xa17   :  { %450 = vrot.lane.b32.xlu2 %v448_v31, %s1028_s0 }
 0xa71   :  { %v451_v32 = vpop.permute.xlu2 %450 }
 0xa72   :  { %v453_v33 = vadd.f32 %v451_v32, %v132_v15 }
 0xa74   :  { %900 = vtanh.f32 %v453_v33 }
 0xa7a   :  { %v901_v34 = vpop.eup %900 }
 0xa7b   :  { %457 = vrot.lane.b32.xlu0 %v901_v34, %s1029_s2 }
 0xaed   :  { %v458_v36 = vpop.permute.xlu0 %457 }
 0xaee   :  { %v460_v38 = vmul.f32 %v458_v36, %v455_v35 }
 0xaf0   :  { %v462_v39 = vadd.f32 %v461_v37, %v460_v38 }
 0xaf2   :  { %464 = vrot.lane.b32.xlu1 %v462_v39, %s1029_s2 }
 0xb64   :  { %v465_v41 = vpop.permute.xlu1 %464 }
 0xb65   :  { %844 = vmatmul.msk.f32.vlgmr.msra.gmra.mxu3 %vm144_vm5, %v465_v41 }
 0xbe8   :  { %v485_v44 = vpop.f32.mrf.mxu3 }
 0xbe9   :  { %v486_v45 = vadd.f32 %v1093_v8, %v485_v44 }
 0xbeb   :  { %509 = vrot.lane.b32.xlu2 %v486_v45, %s1028_s0  ;;  %v488_v48 = vadd.f32 %v486_v45, %v135_v47 }
 0xbed   :  { %v845_v49 = vmul.f32 -1.442695, %v488_v48  ;;  %v663_v48 = vld [vmem:[#allocation5] sm:$0xff] }
 0xbef   :  { %902 = vpow2.f32 %v845_v49 }
 0xbf5   :  { %v903_v50 = vpop.eup %902 }
 0xbf6   :  { %v492_v51 = vadd.f32 1.0, %v903_v50 }
 0xbf8   :  { %904 = vrcp.f32 %v492_v51  ;;  %v504_v57 = vand.u32 2147483648, %v492_v51  ;;  %vm498_vm8 = vweird.f32 %v492_v51  ;;  %v502_v58 = vand.u32 2147483647, %v492_v51 }
 0xbfa   :  { %v505_v60 = vor.u32 1.1754944e-38, %v504_v57  ;;  %vm503_vm10 = vcmp.eq.f32.partialorder %v502_v58, 8.507059e+37  ;;  %v661_v58 = vld [vmem:[#allocation7 + $0x68] sm:$0xff] }
 0xbfb   :  { %705 = vmatpush.msra.mxu1 %v661_v58 }
 0xbfe   :  { %v905_v52 = vpop.eup %904 }
 0xbff   :  { %v494_v53 = vmul.f32 %v905_v52, %v492_v51  ;;  %vm499_vm0 = vweird.f32 %v905_v52 }
 0xc00   :  { %vm500_vm9 = vmor %vm498_vm8, %vm499_vm0 }
 0xc01   :  { %v495_v54 = vsub.f32 1.0, %v494_v53 }
 0xc03   :  { %v496_v55 = vmul.f32 %v905_v52, %v495_v54 }
 0xc05   :  { %v497_v56 = vadd.f32 %v905_v52, %v496_v55 }
 0xc07   :  { %v501_v59 = vsel %vm500_vm9, %v905_v52, %v497_v56 }
 0xc08   :  { %v506_v62 = vsel %vm503_vm10, %v505_v60, %v501_v59  ;;  %v660_v59 = vld [vmem:[#allocation7 + $0x60] sm:$0xff]  ;;  %v659_v60 = vld [vmem:[#allocation7 + $0x58] sm:$0xff] }
 0xc09   :  { %v519_v3 = vsub.f32 1.0, %v506_v62  ;;  %v525_v5 = vmul.f32 %v506_v62, %v462_v39  ;;  %706 = vmatpush.msra.mxu1 %v660_v59 }
 0xc0b   :  { %707 = vmatpush.msra.mxu1 %v659_v60 }
 0xc45   :  { %v510_v61 = vpop.permute.xlu2 %509 }
 0xc46   :  { %v512_v63 = vmul.f32 %v510_v61, %v506_v62  ;;  %v658_v61 = vld [vmem:[#allocation7 + $0x50] sm:$0xff] }
 0xc47   :  { %708 = vmatpush.msra.mxu1 %v658_v61 }
 0xc48   :  { %514 = vrot.lane.b32.xlu0 %v512_v63, %s1028_s0 }
 0xcba   :  { %v515_v0 = vpop.permute.xlu0 %514 }
 0xcbb   :  { %v517_v1 = vadd.f32 %v515_v0, %v135_v47  ;;  %v656_v47 = vld [vmem:[#allocation7 + $0x40] sm:$0xff]  ;;  %v868_v0 = vld [vmem:[#allocation7 + $0x48] ss:$0 sm:$0xff] }
 0xcbc   :  { %684 = vmatpush.msrb.mxu3 %v656_v47 }
 0xcbd   :  { %906 = vtanh.f32 %v517_v1  ;;  %850 = vmatmul.msk.f32.vlgmr.msrb.gmra.mxu3 %vm665_vm15, %v663_v48 }
 0xcc3   :  { %v907_v2 = vpop.eup %906 }
 0xcc4   :  { %521 = vrot.lane.b32.xlu1 %v907_v2, %s1029_s2 }
 0xd36   :  { %v522_v4 = vpop.permute.xlu1 %521 }
 0xd37   :  { %v524_v6 = vmul.f32 %v522_v4, %v519_v3  ;;  %v721_v4 = vld [vmem:[#allocation7 + $0xb0] sm:$0xff] }
 0xd38   :  { %738 = vmatpush.msra.mxu2 %v721_v4 }
 0xd39   :  { %v526_v7 = vadd.f32 %v525_v5, %v524_v6  ;;  %v717_v5 = vld [vmem:[#allocation7 + $0x90] sm:$0xff]  ;;  %v720_v6 = vld [vmem:[#allocation7 + $0xa8] sm:$0xff] }
 0xd3a   :  { %763 = vmatpush.msra.mxu3 %v717_v5  ;;  %739 = vmatpush.msra.mxu2 %v720_v6 }
 0xd3b   :  { %528 = vrot.lane.b32.xlu2 %v526_v7, %s1029_s2 }
 0xd40   :  { %v686_v2 = vpop.f32.mrf.mxu3 }
 0xd41   :  { %v687_v3 = vadd.f32 %v868_v0, %v686_v2 }
 0xd95   :  { %v529_v9 = vpop.permute.xlu2 %528 }
 0xd96   :  { %846 = vmatmul.msk.f32.vlgmr.msrb.gmra.mxu1 %vm144_vm5, %v529_v9  ;;  %v719_v9 = vld [vmem:[#allocation7 + $0xa0] sm:$0xff] }
 0xd97   :  { %740 = vmatpush.msra.mxu2 %v719_v9 }
 0xd9e   :  { %851 = vmatmul.msk.f32.vlgmr.msra.gmra.mxu1 %vm144_vm5, %v687_v3 }
 0xe13   :  { %v549_v10 = vpop.f32.mrf.mxu1 }
 0xe14   :  { %v550_v12 = vadd.f32 %v1093_v8, %v549_v10  ;;  %v715_v10 = vld [vmem:[#allocation7 + $0x80] sm:$0xff] }
 0xe16   :  { %573 = vrot.lane.b32.xlu0 %v550_v12, %s1028_s0  ;;  %v552_v14 = vadd.f32 %v550_v12, %v138_v13  ;;  %v718_v12 = vld [vmem:[#allocation7 + $0x98] sm:$0xff] }
 0xe17   :  { %741 = vmatpush.msra.mxu2 %v718_v12 }
 0xe18   :  { %v847_v15 = vmul.f32 -1.442695, %v552_v14 }
 0xe1a   :  { %908 = vpow2.f32 %v847_v15 }
 0xe20   :  { %v909_v16 = vpop.eup %908 }
 0xe21   :  { %v556_v17 = vadd.f32 1.0, %v909_v16 }
 0xe23   :  { %910 = vrcp.f32 %v556_v17  ;;  %v568_v23 = vand.u32 2147483648, %v556_v17  ;;  %vm562_vm12 = vweird.f32 %v556_v17  ;;  %v566_v24 = vand.u32 2147483647, %v556_v17 }
 0xe25   :  { %v569_v26 = vor.u32 1.1754944e-38, %v568_v23  ;;  %vm567_vm14 = vcmp.eq.f32.partialorder %v566_v24, 8.507059e+37  ;;  %v781_v24 = vld [vmem:[#allocation7 + $0xf8] sm:$0xff] }
 0xe26   :  { %796 = vmatpush.msrb.mxu1 %v781_v24 }
 0xe29   :  { %v911_v18 = vpop.eup %910 }
 0xe2a   :  { %v558_v19 = vmul.f32 %v911_v18, %v556_v17  ;;  %vm563_vm11 = vweird.f32 %v911_v18 }
 0xe2b   :  { %vm564_vm13 = vmor %vm562_vm12, %vm563_vm11 }
 0xe2c   :  { %v559_v20 = vsub.f32 1.0, %v558_v19 }
 0xe2e   :  { %v560_v21 = vmul.f32 %v911_v18, %v559_v20  ;;  %v869_v20 = vld [vmem:[#allocation7 + $0x70] ss:$0 sm:$0xff] }
 0xe30   :  { %v561_v22 = vadd.f32 %v911_v18, %v560_v21  ;;  %v710_v21 = vpop.f32.mrf.mxu1 }
 0xe32   :  { %v565_v25 = vsel %vm564_vm13, %v911_v18, %v561_v22  ;;  %v711_v22 = vadd.f32 %v869_v20, %v710_v21 }
 0xe33   :  { %v570_v27 = vsel %vm567_vm14, %v569_v26, %v565_v25  ;;  %v780_v25 = vld [vmem:[#allocation7 + $0xf0] sm:$0xff]  ;;  %v779_v26 = vld [vmem:[#allocation7 + $0xe8] sm:$0xff] }
 0xe34   :  { %v583_v32 = vsub.f32 1.0, %v570_v27  ;;  %v589_v34 = vmul.f32 %v570_v27, %v526_v7  ;;  %v716_v7 = vld [vmem:[#allocation7 + $0x88] sm:$0xff]  ;;  %v713_v23 = vmax.f32 %v711_v22, 0.0  ;;  %797 = vmatpush.msrb.mxu1 %v780_v25 }
 0xe35   :  { %764 = vmatpush.msra.mxu3 %v716_v7 }
 0xe36   :  { %798 = vmatpush.msrb.mxu1 %v779_v26 }
 0xe37   :  { %765 = vmatpush.msra.mxu3 %v715_v10 }
 0xe88   :  { %v574_v42 = vpop.permute.xlu0 %573 }
 0xe89   :  { %v576_v28 = vmul.f32 %v574_v42, %v570_v27  ;;  %v778_v42 = vld [vmem:[#allocation7 + $0xe0] sm:$0xff] }
 0xe8a   :  { %799 = vmatpush.msrb.mxu1 %v778_v42 }
 0xe8b   :  { %578 = vrot.lane.b32.xlu1 %v576_v28, %s1028_s0  ;;  %v777_v28 = vld [vmem:[#allocation7 + $0xd8] sm:$0xff] }
 0xe8c   :  { %800 = vmatpush.msrb.mxu1 %v777_v28 }
 0xefd   :  { %v579_v29 = vpop.permute.xlu1 %578 }
 0xefe   :  { %v581_v30 = vadd.f32 %v579_v29, %v138_v13  ;;  %v714_v13 = vld [vmem:[#allocation7 + $0x78] sm:$0xff]  ;;  %v776_v29 = vld [vmem:[#allocation7 + $0xd0] sm:$0xff] }
 0xeff   :  { %766 = vmatpush.msra.mxu3 %v714_v13  ;;  %801 = vmatpush.msrb.mxu1 %v776_v29 }
 0xf00   :  { %912 = vtanh.f32 %v581_v30  ;;  %v775_v30 = vld [vmem:[#allocation7 + $0xc8] sm:$0xff] }
 0xf01   :  { %802 = vmatpush.msrb.mxu1 %v775_v30 }
 0xf06   :  { %v913_v31 = vpop.eup %912 }
 0xf07   :  { %585 = vrot.lane.b32.xlu2 %v913_v31, %s1029_s2  ;;  %v774_v31 = vld [vmem:[#allocation7 + $0xc0] sm:$0xff] }
 0xf08   :  { %803 = vmatpush.msrb.mxu1 %v774_v31 }
 0xf61   :  { %v586_v33 = vpop.permute.xlu2 %585 }
 0xf62   :  { %v588_v35 = vmul.f32 %v586_v33, %v583_v32  ;;  %v870_v33 = vld [vmem:[#allocation7 + $0xb8] ss:$0 sm:$0xff] }
 0xf64   :  { %v1164_v36 = vadd.f32 %v589_v34, %v588_v35 }
 0xf66   :  { %592 = vrot.lane.b32.xlu0 %v1164_v36, %s1029_s2 }
 0xfd8   :  { %v593_v37 = vpop.permute.xlu0 %592 }
 0xfd9   :  { %848 = vmatmul.msk.f32.vlgmr.msrb.gmra.mxu2 %vm144_vm5, %v593_v37 }
 0xfe1   :  { %852 = vmatmul.msk.f32.vlgmr.msra.gmra.mxu2 %vm144_vm5, %v713_v23 }
0x105c   :  { %v613_v38 = vpop.f32.mrf.mxu2 }
0x105d   :  { %v614_v39 = vadd.f32 %v1093_v8, %v613_v38  ;;  %v871_v38 = vld [vmem:[#allocation7 + $0x100] ss:$0 sm:$0xff] }
0x105f   :  { %637 = vrot.lane.b32.xlu1 %v614_v39, %s1028_s0  ;;  %v616_v41 = vadd.f32 %v614_v39, %v141_v40 }
0x1061   :  { %v849_v44 = vmul.f32 -1.442695, %v616_v41 }
0x1063   :  { %914 = vpow2.f32 %v849_v44 }
0x1064   :  { %v743_v32 = vpop.f32.mrf.mxu2 }
0x1069   :  { %v915_v45 = vpop.eup %914 }
0x106a   :  { %v620_v46 = vadd.f32 1.0, %v915_v45 }
0x106c   :  { %916 = vrcp.f32 %v620_v46  ;;  %v632_v53 = vand.u32 2147483648, %v620_v46  ;;  %vm626_vm2 = vweird.f32 %v620_v46  ;;  %v630_v11 = vand.u32 2147483647, %v620_v46 }
0x106e   :  { %v633_v54 = vor.u32 1.1754944e-38, %v632_v53  ;;  %vm631_vm4 = vcmp.eq.f32.partialorder %v630_v11, 8.507059e+37 }
0x1072   :  { %v917_v49 = vpop.eup %916 }
0x1073   :  { %v622_v50 = vmul.f32 %v917_v49, %v620_v46  ;;  %vm627_vm1 = vweird.f32 %v917_v49 }
0x1074   :  { %vm628_vm3 = vmor %vm626_vm2, %vm627_vm1 }
0x1075   :  { %v623_v51 = vsub.f32 1.0, %v622_v50 }
0x1077   :  { %v624_v8 = vmul.f32 %v917_v49, %v623_v51 }
0x1079   :  { %v625_v52 = vadd.f32 %v917_v49, %v624_v8 }
0x107b   :  { %v629_v43 = vsel %vm628_vm3, %v917_v49, %v625_v52 }
0x107c   :  { %v634_v56 = vsel %vm631_vm4, %v633_v54, %v629_v43 }
0x107d   :  { %v647_v14 = vsub.f32 1.0, %v634_v56  ;;  %v653_v16 = vmul.f32 %v634_v56, %v1164_v36 }
0x10d1   :  { %v638_v55 = vpop.permute.xlu1 %637 }
0x10d2   :  { %v640_v57 = vmul.f32 %v638_v55, %v634_v56 }
0x10d4   :  { %642 = vrot.lane.b32.xlu2 %v640_v57, %s1028_s0 }
0x112e   :  { %v643_v62 = vpop.permute.xlu2 %642 }
0x112f   :  { %v645_v63 = vadd.f32 %v643_v62, %v141_v40 }
0x1131   :  { %918 = vtanh.f32 %v645_v63 }
0x1137   :  { %v919_v1 = vpop.eup %918 }
0x1138   :  { %649 = vrot.lane.b32.xlu0 %v919_v1, %s1029_s2 }
0x11aa   :  { %v650_v15 = vpop.permute.xlu0 %649 }
0x11ab   :  { %v652_v17 = vmul.f32 %v650_v15, %v647_v14 }
0x11ad   :  { %v654_v18 = vadd.f32 %v653_v16, %v652_v17 }
0x11af   :  { %v655_v19 = vmax.f32 %v654_v18, 0.0 }
0x11b1   :  { %747 = vrot.lane.b32.xlu1 %v655_v19, %s1029_s2 }
0x1223   :  { %v748_v27 = vpop.permute.xlu1 %747 }
0x1224   :  { %853 = vmatmul.msk.f32.vlgmr.msra.gmra.mxu3 %vm144_vm5, %v748_v27 }
0x12a7   :  { %v768_v34 = vpop.f32.mrf.mxu3 }
0x12a8   :  { %v769_v35 = vadd.f32 %v768_v34, %v743_v32 }
0x12aa   :  { %v772_v36 = vadd.f32 %v870_v33, %v769_v35 }
0x12ac   :  { %v773_v37 = vmax.f32 %v772_v36, 0.0 }
0x12ae   :  { %854 = vmatmul.msk.f32.vlgmr.msrb.gmra.mxu1 %vm784_vm6, %v773_v37 }
0x132b   :  { %v805_v39 = vpop.f32.mrf.mxu1 }
0x132c   :  { %v806_v40 = vadd.f32 %v871_v38, %v805_v39 }
0x132e   :  { %808 = vst [vmem:[#allocation8] sm:$0xff] %v806_v40 }
0x132f   :  { %819 = dma.vmem_to_hbm [thread:$0]  %s815_s29, 128, %s817_s5, [#allocation4]  }
0x1330   :  { %1020 = dma.done.wait [#allocation4], 128  }
0x1331   :  { %1021 = vsyncadd [#allocation4], 4294967168 }
0x1332   :  { %824 = vsyncpa [#allocation3], 1 }
0x1333   :  { %825 = vsyncpa [#allocation6], 1 }
0x1334   :  { %826 = vsyncpa [#allocation4], 1 }

</bundles_post_ra>
